<compile_context>
chip_gen: v7x
topology: tpu7x:2x2x1
jax: 0.10.0
libtpu: 0.0.40
codegen_flags: <defaults>
</compile_context>

<pallas_src>
import jax
import jax.numpy as jnp
from jax import lax
from jax.experimental import pallas as pl
from jax.experimental.pallas import tpu as pltpu


# ----------------------------------------------------------------------------
# Generic fused 3x3 conv (+ folded BN + activation) over N input branches.
# ----------------------------------------------------------------------------
def _make_conv_kernel(cins, taps, act):
    n_br = len(cins)

    def kernel(*refs):
        # refs: x_0..x_{n-1} (bf16), w_0..w_{n-1} (bf16), scale, bias, o, acc
        xs = refs[:n_br]
        ws = refs[n_br:2 * n_br]
        scale_ref = refs[2 * n_br]
        bias_ref = refs[2 * n_br + 1]
        o_ref = refs[2 * n_br + 2]
        acc_ref = refs[2 * n_br + 3]

        tb, H, W, tco = o_ref.shape
        first = True
        for i in range(n_br):
            x_ref, w_ref, cin = xs[i], ws[i], cins[i]
            for tap in range(taps):
                if taps == 9:
                    dy, dx = tap // 3, tap % 3
                else:
                    dy, dx = 0, 0
                win = x_ref[:, dy:dy + H, dx:dx + W, :]           # bf16, no cast
                win = win.reshape(tb * H * W, cin)
                wt = w_ref[tap * cin:(tap + 1) * cin, :]          # (cin, tco) bf16
                part = jnp.dot(win, wt, preferred_element_type=jnp.float32)
                if first:
                    acc_ref[...] = part                            # init, no zero-fill
                    first = False
                else:
                    acc_ref[...] += part                           # f32 VMEM accumulate
        y = acc_ref[...] * scale_ref[...] + bias_ref[...]          # f32 VPU epilogue
        if act == "relu":
            y = jnp.maximum(y, 0.0)
        o_ref[...] = y.reshape(tb, H, W, tco).astype(o_ref.dtype)  # bf16 store

    return kernel


def conv3x3_block(xs, w_list, scale, bias, act="relu", taps=9):
    """Fused conv3x3(+BN+act) over N concatenated input branches.

    xs:     list of (B,H,W,Cin_i) activations (cast to bf16 internally)
    w_list: list of (taps*Cin_i, Cout) bf16 weight blocks (tap-major rows)
    scale:  (1,Cout) f32 folded-BN scale, bias: (1,Cout) f32 folded bias
    returns (B,H,W,Cout) bf16
    """
    assert taps in (9, 1)
    B, H, W, _ = xs[0].shape
    cout = w_list[0].shape[1]
    cins = [int(x.shape[-1]) for x in xs]
    pad = 1 if taps == 9 else 0

    xs = [x.astype(jnp.bfloat16) for x in xs]
    if pad:
        xs = [jnp.pad(x, ((0, 0), (pad, pad), (pad, pad), (0, 0))) for x in xs]

    # Cout tile: full for <=320-wide layers, 256 lanes (MXU width) for 512/1024.
    tco = 256 if cout > 320 else cout
    assert cout % tco == 0
    n_co = cout // tco

    # Per-step VMEM estimate (double-buffered ins/outs + weights + f32 acc):
    per_b_in = sum((H + 2 * pad) * (W + 2 * pad) * c * 2 for c in cins)
    per_b_out = H * W * tco * 2
    per_b_acc = H * W * tco * 4
    w_step = sum(taps * c * tco * 2 for c in cins)

    def fits(tb):
        return (2 * tb * per_b_in + 2 * w_step + 2 * tb * per_b_out
                + tb * per_b_acc) <= 24 * 1024 * 1024

    tb = B if fits(B) else 1        # fold batch into the matmul M dim when it fits
    assert B % tb == 0
    n_b = B // tb

    # Grid order: keep the larger operand resident across the inner axis so it
    # is not re-DMA'd every step.
    weights_resident = w_step >= tb * per_b_in
    if weights_resident:
        grid = (n_co, n_b)
        bi = lambda a, b: b
        ci = lambda a, b: a
    else:
        grid = (n_b, n_co)
        bi = lambda a, b: a
        ci = lambda a, b: b

    x_specs = [pl.BlockSpec((tb, H + 2 * pad, W + 2 * pad, c),
                            lambda a, b: (bi(a, b), 0, 0, 0)) for c in cins]
    w_specs = [pl.BlockSpec((taps * c, tco),
                            lambda a, b: (0, ci(a, b))) for c in cins]
    sb_spec = pl.BlockSpec((1, tco), lambda a, b: (0, ci(a, b)))
    o_spec = pl.BlockSpec((tb, H, W, tco),
                          lambda a, b: (bi(a, b), 0, 0, ci(a, b)))

    return pl.pallas_call(
        _make_conv_kernel(cins, taps, act),
        out_shape=jax.ShapeDtypeStruct((B, H, W, cout), jnp.bfloat16),
        grid=grid,
        in_specs=x_specs + w_specs + [sb_spec, sb_spec],
        out_specs=o_spec,
        scratch_shapes=[pltpu.VMEM((tb * H * W, tco), jnp.float32)],
        compiler_params=pltpu.CompilerParams(
            dimension_semantics=("parallel", "parallel"),
            vmem_limit_bytes=48 * 1024 * 1024),
    )(*xs, *w_list, scale, bias)


# ----------------------------------------------------------------------------
# Memory-bound glue (jnp / XLA): im2col, maxpool, bilinear upsample.
# ----------------------------------------------------------------------------
def im2col3x3(x):
    """(B,H,W,C) -> (B,H,W,9*C), tap-major channel order (matches weight rows)."""
    B, H, W, C = x.shape
    xp = jnp.pad(x, ((0, 0), (1, 1), (1, 1), (0, 0)))
    wins = [xp[:, dy:dy + H, dx:dx + W, :] for dy in range(3) for dx in range(3)]
    return jnp.concatenate(wins, axis=-1)


def maxpool2d(x, k):
    B, H, W, C = x.shape
    # ceil_mode is a no-op here: spatial sizes divide the pool size exactly.
    assert H % k == 0 and W % k == 0
    return x.reshape(B, H // k, k, W // k, k, C).max(axis=(2, 4))


def upsample_bilinear(x, k):
    B, H, W, C = x.shape
    return jax.image.resize(x, (B, H * k, W * k, C),
                            method="bilinear").astype(x.dtype)


# ----------------------------------------------------------------------------
# Parameters (deterministic, kaiming-style) with BN folding; fusion-conv
# weights are pre-split per concat branch for the fused-concat kernel path.
# ----------------------------------------------------------------------------
def make_conv_params(key, cin, cout, with_bn=True, split=None):
    kw, kb, kg = jax.random.split(key, 3)
    std = (2.0 / (9 * cin)) ** 0.5
    w = jax.random.normal(kw, (3, 3, cin, cout), jnp.float32) * std
    b = jax.random.uniform(kb, (cout,), jnp.float32, -std, std)
    if with_bn:
        gamma = 1.0 + 0.02 * jax.random.normal(kg, (cout,), jnp.float32)
        beta = jnp.zeros((cout,), jnp.float32)
        running_mean = jnp.zeros((cout,), jnp.float32)
        running_var = jnp.ones((cout,), jnp.float32)
        scale = gamma * jax.lax.rsqrt(running_var + 1e-5)
        bias = beta + scale * (b - running_mean)
    else:
        scale = jnp.ones((cout,), jnp.float32)
        bias = b
    if split is None:
        split = [cin]
    w_list, off = [], 0
    for c in split:
        w_list.append(
            w[:, :, off:off + c, :].reshape(9 * c, cout).astype(jnp.bfloat16))
        off += c
    return dict(w_list=w_list,
                scale=scale.reshape(1, cout),
                bias=bias.reshape(1, cout))


FILTERS = [64, 128, 256, 512, 1024]
CAT_CH = 64          # CatChannels
UP_CH = CAT_CH * 5   # UpChannels = 320


def build_params(key, n_channels=3, n_classes=2):
    counter = [0]

    def nk():
        counter[0] += 1
        return jax.random.fold_in(key, counter[0])

    p = {}
    enc_io = [(n_channels, 64), (64, 128), (128, 256), (256, 512), (512, 1024)]
    for i, (cin, cout) in enumerate(enc_io, start=1):
        p[f"conv{i}_1"] = make_conv_params(nk(), cin, cout)
        p[f"conv{i}_2"] = make_conv_params(nk(), cout, cout)

    branch_cin = {
        "h1_PT_hd4": 64, "h2_PT_hd4": 128, "h3_PT_hd4": 256,
        "h4_Cat_hd4": 512, "hd5_UT_hd4": 1024,
        "h1_PT_hd3": 64, "h2_PT_hd3": 128, "h3_Cat_hd3": 256,
        "hd4_UT_hd3": UP_CH, "hd5_UT_hd3": 1024,
        "h1_PT_hd2": 64, "h2_Cat_hd2": 128, "hd3_UT_hd2": UP_CH,
        "hd4_UT_hd2": UP_CH, "hd5_UT_hd2": 1024,
        "h1_Cat_hd1": 64, "hd2_UT_hd1": UP_CH, "hd3_UT_hd1": UP_CH,
        "hd4_UT_hd1": UP_CH, "hd5_UT_hd1": 1024,
    }
    for name, cin in branch_cin.items():
        p[name] = make_conv_params(nk(), cin, CAT_CH)

    # fusion convs: weights pre-split into 5 x 64-channel K blocks (fused concat)
    for name in ("conv4d_1", "conv3d_1", "conv2d_1", "conv1d_1"):
        p[name] = make_conv_params(nk(), UP_CH, UP_CH, split=[CAT_CH] * 5)

    # deep-supervision heads (no BN, Cout = n_classes) -> XLA path
    for name in ("outconv1", "outconv2", "outconv3", "outconv4"):
        p[name] = make_conv_params(nk(), UP_CH, n_classes, with_bn=False)
    p["outconv5"] = make_conv_params(nk(), 1024, n_classes, with_bn=False)
    return p


# ----------------------------------------------------------------------------
# Forward pass (mirrors UNet3Plus_DeepSup.forward).
# ----------------------------------------------------------------------------
def unet3plus_deepsup_forward(params, x_nchw):
    x = jnp.transpose(x_nchw, (0, 2, 3, 1)).astype(jnp.bfloat16)   # NHWC bf16

    def cba(name, hs, act="relu"):
        if not isinstance(hs, (list, tuple)):
            hs = [hs]
        q = params[name]
        return conv3x3_block(list(hs), q["w_list"], q["scale"], q["bias"], act=act)

    def first_conv(name, h):
        # Cin=3: im2col to a single K=27 matmul (MXU K dim not wasted).
        q = params[name]
        return conv3x3_block([im2col3x3(h)], q["w_list"], q["scale"], q["bias"],
                             act="relu", taps=1)

    def head(name, h, up):
        # Deep-supervision outconv (Cout=2): 2-lane Pallas output would force
        # masked stores, so run as a plain XLA conv, then upsample + sigmoid.
        q = params[name]
        cin = h.shape[-1]
        cout = q["w_list"][0].shape[1]
        w = q["w_list"][0].reshape(3, 3, cin, cout)
        y = lax.conv_general_dilated(
            h.astype(jnp.bfloat16), w, (1, 1), "SAME",
            dimension_numbers=("NHWC", "HWIO", "NHWC"),
            preferred_element_type=jnp.float32)
        y = y * q["scale"].reshape(1, 1, 1, cout) + q["bias"].reshape(1, 1, 1, cout)
        if up > 1:
            B, H, W, C = y.shape
            y = jax.image.resize(y, (B, H * up, W * up, C), method="bilinear")
        return jnp.transpose(jax.nn.sigmoid(y), (0, 3, 1, 2))   # NCHW like torch

    # ---------------- encoder ----------------
    h1 = cba("conv1_2", first_conv("conv1_1", x))
    h2 = cba("conv2_2", cba("conv2_1", maxpool2d(h1, 2)))
    h3 = cba("conv3_2", cba("conv3_1", maxpool2d(h2, 2)))
    h4 = cba("conv4_2", cba("conv4_1", maxpool2d(h3, 2)))
    hd5 = cba("conv5_2", cba("conv5_1", maxpool2d(h4, 2)))

    # -------- stage 4d (concat fused into conv4d_1) --------
    hd4 = cba("conv4d_1", [
        cba("h1_PT_hd4", maxpool2d(h1, 8)),
        cba("h2_PT_hd4", maxpool2d(h2, 4)),
        cba("h3_PT_hd4", maxpool2d(h3, 2)),
        cba("h4_Cat_hd4", h4),
        cba("hd5_UT_hd4", upsample_bilinear(hd5, 2)),
    ])

    # -------- stage 3d --------
    hd3 = cba("conv3d_1", [
        cba("h1_PT_hd3", maxpool2d(h1, 4)),
        cba("h2_PT_hd3", maxpool2d(h2, 2)),
        cba("h3_Cat_hd3", h3),
        cba("hd4_UT_hd3", upsample_bilinear(hd4, 2)),
        cba("hd5_UT_hd3", upsample_bilinear(hd5, 4)),
    ])

    # -------- stage 2d --------
    hd2 = cba("conv2d_1", [
        cba("h1_PT_hd2", maxpool2d(h1, 2)),
        cba("h2_Cat_hd2", h2),
        cba("hd3_UT_hd2", upsample_bilinear(hd3, 2)),
        cba("hd4_UT_hd2", upsample_bilinear(hd4, 4)),
        cba("hd5_UT_hd2", upsample_bilinear(hd5, 8)),
    ])

    # -------- stage 1d --------
    hd1 = cba("conv1d_1", [
        cba("h1_Cat_hd1", h1),
        cba("hd2_UT_hd1", upsample_bilinear(hd2, 2)),
        cba("hd3_UT_hd1", upsample_bilinear(hd3, 4)),
        cba("hd4_UT_hd1", upsample_bilinear(hd4, 8)),
        cba("hd5_UT_hd1", upsample_bilinear(hd5, 16)),
    ])

    # ------------- deep supervision heads -------------
    d1 = head("outconv1", hd1, 1)
    d2 = head("outconv2", hd2, 2)
    d3 = head("outconv3", hd3, 4)
    d4 = head("outconv4", hd4, 8)
    d5 = head("outconv5", hd5, 16)
    return d1, d2, d3, d4, d5


# ----------------------------------------------------------------------------
# Self-check of every structural kernel path against lax.conv (same bf16 data).
# ----------------------------------------------------------------------------
def _selfcheck():
    key = jax.random.PRNGKey(7)

    def ref_conv(x, w, scale, bias):
        y = lax.conv_general_dilated(
            x.astype(jnp.bfloat16), w.astype(jnp.bfloat16), (1, 1), "SAME",
            dimension_numbers=("NHWC", "HWIO", "NHWC"),
            preferred_element_type=jnp.float32)
        y = y * scale.reshape(1, 1, 1, -1) + bias.reshape(1, 1, 1, -1)
        return jnp.maximum(y, 0.0)

    # 1) im2col path (Cin=3 -> 64, single K=27 matmul)
    k1, k2, k3, k4 = jax.random.split(jax.random.fold_in(key, 1), 4)
    x = jax.random.normal(k1, (2, 16, 16, 3), jnp.float32)
    w = jax.random.normal(k2, (3, 3, 3, 64), jnp.float32) * (2.0 / 27) ** 0.5
    scale = 1.0 + 0.1 * jax.random.normal(k3, (64,), jnp.float32)
    bias = 0.1 * jax.random.normal(k4, (64,), jnp.float32)
    got = conv3x3_block([im2col3x3(x.astype(jnp.bfloat16))],
                        [w.reshape(27, 64).astype(jnp.bfloat16)],
                        scale.reshape(1, 64), bias.reshape(1, 64), taps=1)
    assert jnp.allclose(got.astype(jnp.float32), ref_conv(x, w, scale, bias),
                        atol=5e-2, rtol=5e-2), "im2col path mismatch"

    # 2) Cout-tiled path (64 -> 512, tco=256)
    k1, k2, k3, k4 = jax.random.split(jax.random.fold_in(key, 2), 4)
    x = jax.random.normal(k1, (2, 8, 8, 64), jnp.float32)
    w = jax.random.normal(k2, (3, 3, 64, 512), jnp.float32) * (2.0 / 576) ** 0.5
    scale = 1.0 + 0.1 * jax.random.normal(k3, (512,), jnp.float32)
    bias = 0.1 * jax.random.normal(k4, (512,), jnp.float32)
    got = conv3x3_block([x], [w.reshape(576, 512).astype(jnp.bfloat16)],
                        scale.reshape(1, 512), bias.reshape(1, 512))
    assert jnp.allclose(got.astype(jnp.float32), ref_conv(x, w, scale, bias),
                        atol=5e-2, rtol=5e-2), "Cout-tiled path mismatch"

    # 3) fused-concat path (5 x 64 -> 320)
    ks = jax.random.split(jax.random.fold_in(key, 3), 8)
    xs = [jax.random.normal(ks[i], (2, 8, 8, 64), jnp.float32) for i in range(5)]
    w = jax.random.normal(ks[5], (3, 3, 320, 320), jnp.float32) * (2.0 / 2880) ** 0.5
    scale = 1.0 + 0.1 * jax.random.normal(ks[6], (320,), jnp.float32)
    bias = 0.1 * jax.random.normal(ks[7], (320,), jnp.float32)
    w_split = [w[:, :, i * 64:(i + 1) * 64, :].reshape(576, 320).astype(jnp.bfloat16)
               for i in range(5)]
    got = conv3x3_block(xs, w_split, scale.reshape(1, 320), bias.reshape(1, 320))
    ref = ref_conv(jnp.concatenate(xs, axis=-1), w, scale, bias)
    assert jnp.allclose(got.astype(jnp.float32), ref,
                        atol=5e-2, rtol=5e-2), "fused-concat path mismatch"


if __name__ == "__main__":
    key = jax.random.PRNGKey(0)
    k_x, k_p = jax.random.split(key)

    batch, n_channels, n_classes, spatial = 2, 3, 2, 16
    x = jax.random.normal(k_x, (batch, n_channels, spatial, spatial),
                          dtype=jnp.float32)
    params = build_params(k_p, n_channels=n_channels, n_classes=n_classes)

    # 1) kernel-level correctness checks (all structural paths)
    _selfcheck()

    # 2) full UNet3+ deep-supervision forward
    fwd = jax.jit(unet3plus_deepsup_forward)
    d1, d2, d3, d4, d5 = fwd(params, x)
    jax.block_until_ready((d1, d2, d3, d4, d5))

    for d in (d1, d2, d3, d4, d5):
        assert d.shape == (batch, n_classes, spatial, spatial)
        assert bool(jnp.all(jnp.isfinite(d)))
        assert bool(jnp.all((d >= 0.0) & (d <= 1.0)))   # post-sigmoid range

    print("KERNEL_OK")
</pallas_src>

<mosaic_0001>
module attributes {stable_mosaic.version = 11 : i64} {
  func.func @kernel(%arg0: i32, %arg1: i32, %arg2: memref<2x16x16x27xbf16, #tpu.memory_space<vmem>>, %arg3: memref<27x64xbf16, #tpu.memory_space<vmem>>, %arg4: memref<1x64xf32, #tpu.memory_space<vmem>>, %arg5: memref<1x64xf32, #tpu.memory_space<vmem>>, %arg6: memref<2x16x16x64xbf16, #tpu.memory_space<vmem>>, %arg7: memref<512x64xf32, #tpu.memory_space<vmem>>) attributes {dimension_semantics = [#tpu.dimension_semantics<parallel>, #tpu.dimension_semantics<parallel>], iteration_bounds = array<i64: 1, 1>, scalar_prefetch = 0 : i64, scratch_operands = 1 : i64, tpu.core_type = #tpu.core_type<tc>, window_params = [{transform_indices = @transform_0, window_bounds = array<i64: 2, 16, 16, 27>}, {transform_indices = @transform_1, window_bounds = array<i64: 27, 64>}, {transform_indices = @transform_2, window_bounds = array<i64: 1, 64>}, {transform_indices = @transform_3, window_bounds = array<i64: 1, 64>}, {transform_indices = @transform_4, window_bounds = array<i64: 2, 16, 16, 64>}]} {
    %c0 = arith.constant 0 : index
    %c0_0 = arith.constant 0 : index
    %c0_1 = arith.constant 0 : index
    %c0_2 = arith.constant 0 : index
    %0 = vector.load %arg2[%c0, %c0_0, %c0_1, %c0_2] : memref<2x16x16x27xbf16, #tpu.memory_space<vmem>>, vector<2x16x16x27xbf16>
    %1 = vector.shape_cast %0 : vector<2x16x16x27xbf16> to vector<512x27xbf16>
    %c0_3 = arith.constant 0 : index
    %c0_4 = arith.constant 0 : index
    %2 = vector.load %arg3[%c0_3, %c0_4] : memref<27x64xbf16, #tpu.memory_space<vmem>>, vector<27x64xbf16>
    %cst = arith.constant dense<0.000000e+00> : vector<512x64xf32>
    %3 = tpu.matmul %1, %2, %cst {dimension_numbers = #tpu.dot_dimension_numbers<[1], [0], [0], [1], [0, 0, 1, 1], [], []>} : vector<512x27xbf16>, vector<27x64xbf16>, vector<512x64xf32> -> vector<512x64xf32>
    %c0_5 = arith.constant 0 : index
    %c0_6 = arith.constant 0 : index
    %4 = vector.load %arg7[%c0_5, %c0_6] : memref<512x64xf32, #tpu.memory_space<vmem>>, vector<512x64xf32>
    tpu.vector_store %arg7[%c0_5, %c0_6], %3 {strides = array<i32>} : memref<512x64xf32, #tpu.memory_space<vmem>>, vector<512x64xf32>,
    %c0_7 = arith.constant 0 : index
    %c0_8 = arith.constant 0 : index
    %5 = vector.load %arg7[%c0_7, %c0_8] : memref<512x64xf32, #tpu.memory_space<vmem>>, vector<512x64xf32>
    %c0_9 = arith.constant 0 : index
    %c0_10 = arith.constant 0 : index
    %6 = vector.load %arg4[%c0_9, %c0_10] : memref<1x64xf32, #tpu.memory_space<vmem>>, vector<1x64xf32>
    %7 = vector.broadcast %6 : vector<1x64xf32> to vector<512x64xf32>
    %8 = arith.mulf %5, %7 : vector<512x64xf32>
    %c0_11 = arith.constant 0 : index
    %c0_12 = arith.constant 0 : index
    %9 = vector.load %arg5[%c0_11, %c0_12] : memref<1x64xf32, #tpu.memory_space<vmem>>, vector<1x64xf32>
    %10 = vector.broadcast %9 : vector<1x64xf32> to vector<512x64xf32>
    %11 = arith.addf %8, %10 : vector<512x64xf32>
    %cst_13 = arith.constant 0.000000e+00 : f32
    %12 = vector.broadcast %cst_13 : f32 to vector<512x64xf32>
    %13 = arith.maximumf %11, %12 : vector<512x64xf32>
    %14 = vector.shape_cast %13 : vector<512x64xf32> to vector<2x16x16x64xf32>
    %15 = arith.truncf %14 : vector<2x16x16x64xf32> to vector<2x16x16x64xbf16>
    %c0_14 = arith.constant 0 : index
    %c0_15 = arith.constant 0 : index
    %c0_16 = arith.constant 0 : index
    %c0_17 = arith.constant 0 : index
    %16 = vector.load %arg6[%c0_14, %c0_15, %c0_16, %c0_17] : memref<2x16x16x64xbf16, #tpu.memory_space<vmem>>, vector<2x16x16x64xbf16>
    tpu.vector_store %arg6[%c0_14, %c0_15, %c0_16, %c0_17], %15 {strides = array<i32>} : memref<2x16x16x64xbf16, #tpu.memory_space<vmem>>, vector<2x16x16x64xbf16>,
    return
  }
  func.func @transform_0(%arg0: i32, %arg1: i32) -> (i32, i32, i32, i32) {
    %c0_i32 = arith.constant 0 : i32
    %c0_i32_0 = arith.constant 0 : i32
    %c0_i32_1 = arith.constant 0 : i32
    %c0_i32_2 = arith.constant 0 : i32
    return %arg0, %c0_i32, %c0_i32_0, %c0_i32_1 : i32, i32, i32, i32
  }
  func.func @transform_1(%arg0: i32, %arg1: i32) -> (i32, i32) {
    %c0_i32 = arith.constant 0 : i32
    %c0_i32_0 = arith.constant 0 : i32
    return %c0_i32, %arg1 : i32, i32
  }
  func.func @transform_2(%arg0: i32, %arg1: i32) -> (i32, i32) {
    %c0_i32 = arith.constant 0 : i32
    %c0_i32_0 = arith.constant 0 : i32
    return %c0_i32, %arg1 : i32, i32
  }
  func.func @transform_3(%arg0: i32, %arg1: i32) -> (i32, i32) {
    %c0_i32 = arith.constant 0 : i32
    %c0_i32_0 = arith.constant 0 : i32
    return %c0_i32, %arg1 : i32, i32
  }
  func.func @transform_4(%arg0: i32, %arg1: i32) -> (i32, i32, i32, i32) {
    %c0_i32 = arith.constant 0 : i32
    %c0_i32_0 = arith.constant 0 : i32
    %c0_i32_1 = arith.constant 0 : i32
    return %arg0, %c0_i32, %c0_i32_0, %arg1 : i32, i32, i32, i32
  }
}

</mosaic_0001>

<bundles_post_ra>
// kernel: tpu_custom_call.1
= control target key start
LH: loop header
LB: loop body
LE: loop exit
PB: predicated region body
PF: predicated region fallthrough
CT: control target
= control target key end

     0   :  { %9 = vsyncpa [#allocation4], 0  ;;  %s2141_s0 = inlined_call_operand.hbm [shape: bf16[2,16,16,27], index: 0, kind: input, shape index: {}]   ;;  %s2142_s1 = inlined_call_operand.hbm [shape: bf16[27,64], index: 1, kind: input, shape index: {}]   ;;  %s2143_s2 = inlined_call_operand.vmem [shape: f32[1,64], index: 2, kind: input, shape index: {}]   ;;  %s2144_s3 = inlined_call_operand.vmem [shape: f32[1,64], index: 3, kind: input, shape index: {}]   ;;  %s2145_s4 = inlined_call_operand.hbm [shape: bf16[2,16,16,64], index: 4, kind: output, shape index: {}]  }
   0x1   :  { %10 = vsyncpa [#allocation7], 0 }
   0x2   :  { %11 = vsyncpa [#allocation5], 0  ;;  %s1767_s15 = smov [#allocation3]   ;;  %s1695_s19 = scalar_lea.hbm %s2141_s0, 4096 }
   0x3   :  { %s17_s16 = sshll.u32 %s1767_s15, 4  ;;  %p1696_p0 = scmp.ne.s32.totalorder %s2141_s0, %s1695_s19  ;;  %s18_s16 = int_to_ptr.vmem [resolvable:$true] %s17_s16 }
   0x4   :  { %p1699_p1 = scmp.lt.u32.totalorder %s1695_s19, %s2141_s0 }
   0x6   :  { %p1701_p2 = pnand %p1699_p1, %p1696_p0 }
   0x8   :  { %1704 = shalt.err (!%p1701_p2)
}
   0x9   :  { %s1705_s24 = scalar_lea.vmem %s18_s16, 4096  ;;  %p1710_p4 = scmp.lt.s32.totalorder %s18_s16, %s18_s16 }
   0xa   :  { %p1706_p3 = scmp.ne.s32.totalorder %s18_s16, %s1705_s24  ;;  %p1711_p5 = scmp.lt.s32.totalorder %s1705_s24, %s1705_s24 }
   0xc   :  { %p1712_p6 = por %p1711_p5, %p1710_p4 }
   0xe   :  { %p1713_p7 = pnand %p1712_p6, %p1706_p3 }
  0x10   :  { %1716 = shalt.err (!%p1713_p7)
}
  0x11   :  { %s1768_s25 = smov 64   ;;  %s1769_s26 = smov 4  }
  0x12   :  { %23 = dma.hbm_to_vmem [thread:$0]  %s2141_s0, 4096, %s18_s16, [#allocation4], %s1768_s25, %s1768_s25, %s1769_s26  }
  0x13   :  { %s1770_s29 = smov [#allocation6]   ;;  %s1717_s7 = scalar_lea.hbm %s2142_s1, 256 }
  0x14   :  { %s29_s30 = sshll.u32 %s1770_s29, 4  ;;  %p1718_p8 = scmp.ne.s32.totalorder %s2142_s1, %s1717_s7  ;;  %s30_s30 = int_to_ptr.vmem [resolvable:$true] %s29_s30 }
  0x15   :  { %p1721_p9 = scmp.lt.u32.totalorder %s1717_s7, %s2142_s1 }
  0x17   :  { %p1723_p10 = pnand %p1721_p9, %p1718_p8 }
  0x19   :  { %1726 = shalt.err (!%p1723_p10)
}
  0x1a   :  { %s1727_s12 = scalar_lea.vmem %s30_s30, 256  ;;  %p1732_p12 = scmp.lt.s32.totalorder %s30_s30, %s30_s30 }
  0x1b   :  { %p1728_p11 = scmp.ne.s32.totalorder %s30_s30, %s1727_s12  ;;  %p1733_p13 = scmp.lt.s32.totalorder %s1727_s12, %s1727_s12 }
  0x1d   :  { %p1734_p0 = por %p1733_p13, %p1732_p12 }
  0x1f   :  { %p1735_p1 = pnand %p1734_p0, %p1728_p11 }
  0x21   :  { %1738 = shalt.err (!%p1735_p1)
}
  0x22   :  { %35 = dma.hbm_to_vmem [thread:$0]  %s2142_s1, 256, %s30_s30, [#allocation7], %s1768_s25, %s1768_s25, %s1769_s26  }
  0x23   :  { %1761 = dma.done.wait [#allocation4], 4096  }
  0x24   :  { %1762 = vsyncadd [#allocation4], 4294963200 }
  0x25   :  { %1763 = dma.done.wait [#allocation7], 256  }
  0x26   :  { %1764 = vsyncadd [#allocation7], 4294967040  ;;  %vm383_vm0 = vcmask 1044480   ;;  %vm384_vm1 = vcmask 1045504   ;;  %v1771_v0 = vmov 65535   ;;  %vm286_vm2 = vcmask 220160  }
  0x27   :  { %v385_v1 = vsel %vm383_vm0, 4294967295, %v1771_v0  ;;  %v1661_v2 = vld [vmem:[#allocation6] sm:$0xff]   ;;  %v1662_v4 = vld [vmem:[#allocation6 + $0x8] sm:$0x3f]   ;;  %v1667_v10 = vld [vmem:[#allocation3 + $0x10] sm:$0xff]   ;;  %vm679_vm3 = vcmask 523264  }
  0x28   :  { %v386_v3 = vsel %vm384_vm1, %v385_v1, 0  ;;  %1583 = vmatprep.subr.bf16.mxu0 %v1661_v2  ;;  %1651 = vmatprep.subr.bf16.mxu1 %v1661_v2  ;;  %v1663_v5 = vld [vmem:[#allocation3] sm:$0xff]   ;;  %v1665_v8 = vld [vmem:[#allocation3 + $0x8] sm:$0xff]   ;;  %v1668_v11 = vld [vmem:[#allocation3 + $0x90] sm:$0xff]   ;;  %vm1270_vm4 = vcmask 519168  }
  0x29   :  { %1584 = vmatpush3.bf16.msra.mxu0 %v1661_v2  ;;  %1653 = vmatpush3.bf16.msra.mxu1 %v1661_v2  ;;  %v388_v6 = vand.u32 %v1662_v4, %v386_v3  ;;  %v1664_v7 = vld [vmem:[#allocation3 + $0x80] sm:$0xff]   ;;  %v1666_v9 = vld [vmem:[#allocation3 + $0x88] sm:$0xff]   ;;  %v1669_v12 = vld [vmem:[#allocation3 + $0x18] sm:$0xff]  }
  0x2a   :  { %1587 = vmatprep.mubr.msk.bf16.mxu0 %vm286_vm2, %v1663_v5  ;;  %1619 = vmatprep.mubr.msk.bf16.mxu1 %vm286_vm2, %v1664_v7  ;;  %v1670_v13 = vld [vmem:[#allocation3 + $0x98] sm:$0xff]   ;;  %v1671_v14 = vld [vmem:[#allocation3 + $0x20] sm:$0xff]   ;;  %v1673_v16 = vld [vmem:[#allocation3 + $0x28] sm:$0xff]  }
  0x2b   :  { %1585 = vmatprep.subr.bf16.mxu0 %v388_v6  ;;  %1652 = vmatprep.subr.bf16.mxu1 %v388_v6  ;;  %v1672_v15 = vld [vmem:[#allocation3 + $0xa0] sm:$0xff]   ;;  %v1674_v17 = vld [vmem:[#allocation3 + $0xa8] sm:$0xff]   ;;  %v1675_v18 = vld [vmem:[#allocation3 + $0x30] sm:$0xff]  }
  0x2c   :  { %v1676_v19 = vld [vmem:[#allocation3 + $0xb0] sm:$0xff]   ;;  %v1677_v20 = vld [vmem:[#allocation3 + $0x38] sm:$0xff]   ;;  %v1679_v22 = vld [vmem:[#allocation3 + $0x40] sm:$0xff]  }
  0x2d   :  { %1586 = vmatpush3.bf16.msra.mxu0 %v388_v6  ;;  %1654 = vmatpush3.bf16.msra.mxu1 %v388_v6  ;;  %v1678_v21 = vld [vmem:[#allocation3 + $0xb8] sm:$0xff]   ;;  %v1680_v23 = vld [vmem:[#allocation3 + $0xc0] sm:$0xff]   ;;  %v1681_v24 = vld [vmem:[#allocation3 + $0x48] sm:$0xff]  }
  0x2e   :  { %v1682_v25 = vld [vmem:[#allocation3 + $0xc8] sm:$0xff]   ;;  %v1683_v26 = vld [vmem:[#allocation3 + $0x50] sm:$0xff]   ;;  %v1685_v28 = vld [vmem:[#allocation3 + $0x58] sm:$0xff]  }
  0x2f   :  { %v1684_v27 = vld [vmem:[#allocation3 + $0xd0] sm:$0xff]   ;;  %v1686_v29 = vld [vmem:[#allocation3 + $0xd8] sm:$0xff]   ;;  %v1687_v30 = vld [vmem:[#allocation3 + $0x60] sm:$0xff]  }
  0x30   :  { %1588 = vmatmul.mubr.msk.bf16.vlgmr.msra.gmra.mrb[0].mxu0 %vm286_vm2, %v1665_v8  ;;  %1620 = vmatmul.mubr.msk.bf16.vlgmr.msra.gmra.mrb[0].mxu1 %vm286_vm2, %v1666_v9  ;;  %v1688_v31 = vld [vmem:[#allocation3 + $0xe0] sm:$0xff]   ;;  %v1689_v32 = vld [vmem:[#allocation3 + $0x68] sm:$0xff]   ;;  %v1691_v34 = vld [vmem:[#allocation3 + $0x70] sm:$0xff]  }
  0x31   :  { %1591 = vmatprep.mubr.msk.bf16.mxu0 %vm286_vm2, %v1667_v10  ;;  %1623 = vmatprep.mubr.msk.bf16.mxu1 %vm286_vm2, %v1668_v11  ;;  %v1690_v33 = vld [vmem:[#allocation3 + $0xe8] sm:$0xff]   ;;  %v1692_v35 = vld [vmem:[#allocation3 + $0xf0] sm:$0xff]   ;;  %v1693_v36 = vld [vmem:[#allocation3 + $0x78] sm:$0xff]  }
  0x32   :  { %v1694_v37 = vld [vmem:[#allocation3 + $0xf8] sm:$0xff]   ;;  %v1871_v46 = vld [vmem:[%s2143_s2] ss:$0 sm:$0xff]  ;;  %s1772_s2 = smov [#allocation8]  }
  0x33   :  { %v1876_v48 = vld [vmem:[%s2144_s3] ss:$0 sm:$0xff]  ;;  %s1340_s3 = sshll.u32 %s1772_s2, 4  ;;  %s1341_s3 = int_to_ptr.vmem [resolvable:$true] %s1340_s3 }
  0x34   :  { %s1739_s17 = scalar_lea.vmem %s1341_s3, 4096  ;;  %p1744_p3 = scmp.lt.s32.totalorder %s1341_s3, %s1341_s3 }
  0x35   :  { %p1740_p2 = scmp.ne.s32.totalorder %s1341_s3, %s1739_s17  ;;  %p1745_p4 = scmp.lt.s32.totalorder %s1739_s17, %s1739_s17 }
  0x37   :  { %p1746_p5 = por %p1745_p4, %p1744_p3 }
  0x38   :  { %1592 = vmatmul.mubr.msk.bf16.gmra.mrb[4].mxu0 %vm286_vm2, %v1669_v12  ;;  %1624 = vmatmul.mubr.msk.bf16.gmra.mrb[4].mxu1 %vm286_vm2, %v1670_v13 }
  0x39   :  { %1595 = vmatprep.mubr.msk.bf16.mxu0 %vm286_vm2, %v1671_v14  ;;  %1627 = vmatprep.mubr.msk.bf16.mxu1 %vm286_vm2, %v1672_v15  ;;  %p1747_p6 = pnand %p1746_p5, %p1740_p2 }
  0x40   :  { %1596 = vmatmul.mubr.msk.bf16.gmra.mrb[8].mxu0 %vm286_vm2, %v1673_v16  ;;  %1628 = vmatmul.mubr.msk.bf16.gmra.mrb[8].mxu1 %vm286_vm2, %v1674_v17 }
  0x41   :  { %1599 = vmatprep.mubr.msk.bf16.mxu0 %vm286_vm2, %v1675_v18  ;;  %1631 = vmatprep.mubr.msk.bf16.mxu1 %vm286_vm2, %v1676_v19 }
  0x48   :  { %1600 = vmatmul.mubr.msk.bf16.gmra.mrb[12].mxu0 %vm286_vm2, %v1677_v20  ;;  %1632 = vmatmul.mubr.msk.bf16.gmra.mrb[12].mxu1 %vm286_vm2, %v1678_v21 }
  0x49   :  { %1603 = vmatprep.mubr.msk.bf16.mxu0 %vm286_vm2, %v1679_v22  ;;  %1635 = vmatprep.mubr.msk.bf16.mxu1 %vm286_vm2, %v1680_v23 }
  0x50   :  { %1604 = vmatmul.mubr.msk.bf16.gmra.mrb[16].mxu0 %vm286_vm2, %v1681_v24  ;;  %1636 = vmatmul.mubr.msk.bf16.gmra.mrb[16].mxu1 %vm286_vm2, %v1682_v25 }
  0x51   :  { %1607 = vmatprep.mubr.msk.bf16.mxu0 %vm286_vm2, %v1683_v26  ;;  %1639 = vmatprep.mubr.msk.bf16.mxu1 %vm286_vm2, %v1684_v27 }
  0x58   :  { %1608 = vmatmul.mubr.msk.bf16.gmra.mrb[20].mxu0 %vm286_vm2, %v1685_v28  ;;  %1640 = vmatmul.mubr.msk.bf16.gmra.mrb[20].mxu1 %vm286_vm2, %v1686_v29 }
  0x59   :  { %1611 = vmatprep.mubr.msk.bf16.mxu0 %vm286_vm2, %v1687_v30  ;;  %1643 = vmatprep.mubr.msk.bf16.mxu1 %vm286_vm2, %v1688_v31 }
  0x60   :  { %1612 = vmatmul.mubr.msk.bf16.gmra.mrb[24].mxu0 %vm286_vm2, %v1689_v32  ;;  %1644 = vmatmul.mubr.msk.bf16.gmra.mrb[24].mxu1 %vm286_vm2, %v1690_v33 }
  0x61   :  { %1615 = vmatprep.mubr.msk.bf16.mxu0 %vm286_vm2, %v1691_v34  ;;  %1647 = vmatprep.mubr.msk.bf16.mxu1 %vm286_vm2, %v1692_v35 }
  0x68   :  { %1616 = vmatmul.mubr.msk.bf16.gmra.mrb[28].mxu0 %vm286_vm2, %v1693_v36  ;;  %1648 = vmatmul.mubr.msk.bf16.gmra.mrb[28].mxu1 %vm286_vm2, %v1694_v37 }
 0x103   :  { %v1589_v38 = vpop.f32.mrb[0].mxu0  ;;  %v1621_v39 = vpop.f32.mrb[0].mxu1 }
 0x104   :  { %682 = vst.msk [vmem:[#allocation2 + $0x10] sm:$0xff] %vm679_vm3, %v1589_v38  ;;  %714 = vst.msk [vmem:[#allocation2 + $0x110] sm:$0xff] %vm679_vm3, %v1621_v39  ;;  %v424_v40 = vpop.f32.mrb[1].mxu0  ;;  %v552_v41 = vpop.f32.mrb[1].mxu1 }
 0x105   :  { %680 = vst.msk [vmem:[#allocation2] sm:$0xff] %vm679_vm3, %v424_v40  ;;  %712 = vst.msk [vmem:[#allocation2 + $0x100] sm:$0xff] %vm679_vm3, %v552_v41  ;;  %v1590_v42 = vpop.f32.mrb[2].mxu0  ;;  %v1622_v43 = vpop.f32.mrb[2].mxu1 }
 0x106   :  { %683 = vst.msk [vmem:[#allocation2 + $0x18] sm:$0xff] %vm679_vm3, %v1590_v42  ;;  %715 = vst.msk [vmem:[#allocation2 + $0x118] sm:$0xff] %vm679_vm3, %v1622_v43  ;;  %v427_v44 = vpop.f32.mrb[3].mxu0  ;;  %v555_v45 = vpop.f32.mrb[3].mxu1 }
 0x107   :  { %681 = vst.msk [vmem:[#allocation2 + $0x8] sm:$0xff] %vm679_vm3, %v427_v44  ;;  %713 = vst.msk [vmem:[#allocation2 + $0x108] sm:$0xff] %vm679_vm3, %v555_v45 }
 0x10b   :  { %v746_v47 = vld [vmem:[#allocation2 + $0x10] sm:$0xff]  ;;  %v1593_v50 = vpop.f32.mrb[4].mxu0  ;;  %v1625_v51 = vpop.f32.mrb[4].mxu1 }
 0x10c   :  { %v778_v49 = vld [vmem:[#allocation2 + $0x110] sm:$0xff]  ;;  %v817_v52 = vmul.f32 %v1871_v46, %v746_v47  ;;  %v744_v54 = vld [vmem:[#allocation2] sm:$0xff]  ;;  %686 = vst.msk [vmem:[#allocation2 + $0x30] sm:$0xff] %vm679_vm3, %v1593_v50  ;;  %718 = vst.msk [vmem:[#allocation2 + $0x130] sm:$0xff] %vm679_vm3, %v1625_v51  ;;  %v440_v56 = vpop.f32.mrb[5].mxu0  ;;  %v568_v57 = vpop.f32.mrb[5].mxu1 }
 0x10d   :  { %v849_v53 = vmul.f32 %v1871_v46, %v778_v49  ;;  %v776_v55 = vld [vmem:[#allocation2 + $0x100] sm:$0xff]  ;;  %v815_v58 = vmul.f32 %v1871_v46, %v744_v54  ;;  %v747_v60 = vld [vmem:[#allocation2 + $0x18] sm:$0xff]  ;;  %684 = vst.msk [vmem:[#allocation2 + $0x20] sm:$0xff] %vm679_vm3, %v440_v56  ;;  %716 = vst.msk [vmem:[#allocation2 + $0x120] sm:$0xff] %vm679_vm3, %v568_v57  ;;  %v1594_v62 = vpop.f32.mrb[6].mxu0  ;;  %v1626_v63 = vpop.f32.mrb[6].mxu1 }
 0x10e   :  { %v847_v59 = vmul.f32 %v1871_v46, %v776_v55  ;;  %v779_v61 = vld [vmem:[#allocation2 + $0x118] sm:$0xff]  ;;  %v888_v0 = vadd.f32 %v1876_v48, %v817_v52  ;;  %v818_v2 = vmul.f32 %v1871_v46, %v747_v60  ;;  %v745_v4 = vld [vmem:[#allocation2 + $0x8] sm:$0xff]  ;;  %687 = vst.msk [vmem:[#allocation2 + $0x38] sm:$0xff] %vm679_vm3, %v1594_v62  ;;  %719 = vst.msk [vmem:[#allocation2 + $0x138] sm:$0xff] %vm679_vm3, %v1626_v63  ;;  %v443_v6 = vpop.f32.mrb[7].mxu0  ;;  %v571_v7 = vpop.f32.mrb[7].mxu1 }
 0x10f   :  { %v920_v1 = vadd.f32 %v1876_v48, %v849_v53  ;;  %v850_v3 = vmul.f32 %v1871_v46, %v779_v61  ;;  %v777_v5 = vld [vmem:[#allocation2 + $0x108] sm:$0xff]  ;;  %v886_v8 = vadd.f32 %v1876_v48, %v815_v58  ;;  %v816_v10 = vmul.f32 %v1871_v46, %v745_v4  ;;  %685 = vst.msk [vmem:[#allocation2 + $0x28] sm:$0xff] %vm679_vm3, %v443_v6 }
 0x110   :  { %v918_v9 = vadd.f32 %v1876_v48, %v847_v59  ;;  %v848_v11 = vmul.f32 %v1871_v46, %v777_v5  ;;  %717 = vst.msk [vmem:[#allocation2 + $0x128] sm:$0xff] %vm679_vm3, %v571_v7  ;;  %v952_v12 = vmax.f32 %v888_v0, 0.0  ;;  %v889_v14 = vadd.f32 %v1876_v48, %v818_v2 }
 0x111   :  { %v984_v13 = vmax.f32 %v920_v1, 0.0  ;;  %v921_v15 = vadd.f32 %v1876_v48, %v850_v3  ;;  %v950_v16 = vmax.f32 %v886_v8, 0.0  ;;  %v887_v18 = vadd.f32 %v1876_v48, %v816_v10 }
 0x112   :  { %v982_v17 = vmax.f32 %v918_v9, 0.0  ;;  %v919_v19 = vadd.f32 %v1876_v48, %v848_v11  ;;  %v1487_v20 = vpack.c.bf16 %v952_v12, %v952_v12  ;;  %v953_v22 = vmax.f32 %v889_v14, 0.0 }
 0x113   :  { %v1519_v21 = vpack.c.bf16 %v984_v13, %v984_v13  ;;  %v985_v23 = vmax.f32 %v921_v15, 0.0  ;;  %v1485_v24 = vpack.c.bf16 %v950_v16, %v950_v16  ;;  %v951_v26 = vmax.f32 %v887_v18, 0.0  ;;  %v750_v28 = vld [vmem:[#allocation2 + $0x30] sm:$0xff]  ;;  %v1597_v30 = vpop.f32.mrb[8].mxu0  ;;  %v1629_v31 = vpop.f32.mrb[8].mxu1 }
 0x114   :  { %v1517_v25 = vpack.c.bf16 %v982_v17, %v982_v17  ;;  %v983_v27 = vmax.f32 %v919_v19, 0.0  ;;  %v782_v29 = vld [vmem:[#allocation2 + $0x130] sm:$0xff]  ;;  %1273 = vst.msk [vmem:[#allocation8 + $0x8] sm:$0xf] %vm1270_vm4, %v1487_v20  ;;  %v1488_v32 = vpack.c.bf16 %v953_v22, %v953_v22  ;;  %v821_v34 = vmul.f32 %v1871_v46, %v750_v28  ;;  %v748_v36 = vld [vmem:[#allocation2 + $0x20] sm:$0xff]  ;;  %v456_v38 = vpop.f32.mrb[9].mxu0 }
 0x115   :  { %1305 = vst.msk [vmem:[#allocation8 + $0x88] sm:$0xf] %vm1270_vm4, %v1519_v21  ;;  %v1520_v33 = vpack.c.bf16 %v985_v23, %v985_v23  ;;  %v853_v35 = vmul.f32 %v1871_v46, %v782_v29  ;;  %v780_v37 = vld [vmem:[#allocation2 + $0x120] sm:$0xff]  ;;  %v584_v39 = vpop.f32.mrb[9].mxu1  ;;  %1271 = vst.msk [vmem:[#allocation8] sm:$0xf] %vm1270_vm4, %v1485_v24  ;;  %v1486_v40 = vpack.c.bf16 %v951_v26, %v951_v26 }
 0x116   :  { %690 = vst.msk [vmem:[#allocation2 + $0x50] sm:$0xff] %vm679_vm3, %v1597_v30  ;;  %722 = vst.msk [vmem:[#allocation2 + $0x150] sm:$0xff] %vm679_vm3, %v1629_v31  ;;  %v1518_v41 = vpack.c.bf16 %v983_v27, %v983_v27  ;;  %v819_v42 = vmul.f32 %v1871_v46, %v748_v36  ;;  %v851_v43 = vmul.f32 %v1871_v46, %v780_v37  ;;  %v751_v44 = vld [vmem:[#allocation2 + $0x38] sm:$0xff]  ;;  %v1598_v47 = vpop.f32.mrb[10].mxu0  ;;  %v1630_v49 = vpop.f32.mrb[10].mxu1  ;;  %v749_v54 = vld [vmem:[#allocation2 + $0x28] sm:$0xff] }
 0x117   :  { %1303 = vst.msk [vmem:[#allocation8 + $0x80] sm:$0xf] %vm1270_vm4, %v1517_v25  ;;  %v783_v45 = vld [vmem:[#allocation2 + $0x138] sm:$0xff]  ;;  %1274 = vst.msk [vmem:[#allocation8 + $0xc] sm:$0xf] %vm1270_vm4, %v1488_v32  ;;  %v892_v50 = vadd.f32 %v1876_v48, %v821_v34  ;;  %v924_v51 = vadd.f32 %v1876_v48, %v853_v35  ;;  %v822_v52 = vmul.f32 %v1871_v46, %v751_v44  ;;  %v781_v55 = vld [vmem:[#allocation2 + $0x128] sm:$0xff] }
 0x118   :  { %688 = vst.msk [vmem:[#allocation2 + $0x40] sm:$0xff] %vm679_vm3, %v456_v38  ;;  %720 = vst.msk [vmem:[#allocation2 + $0x140] sm:$0xff] %vm679_vm3, %v584_v39  ;;  %v854_v53 = vmul.f32 %v1871_v46, %v783_v45  ;;  %v459_v56 = vpop.f32.mrb[11].mxu0  ;;  %v587_v57 = vpop.f32.mrb[11].mxu1  ;;  %v890_v58 = vadd.f32 %v1876_v48, %v819_v42  ;;  %v922_v59 = vadd.f32 %v1876_v48, %v851_v43 }
 0x119   :  { %1306 = vst.msk [vmem:[#allocation8 + $0x8c] sm:$0xf] %vm1270_vm4, %v1520_v33  ;;  %1272 = vst.msk [vmem:[#allocation8 + $0x4] sm:$0xf] %vm1270_vm4, %v1486_v40  ;;  %v820_v60 = vmul.f32 %v1871_v46, %v749_v54  ;;  %v852_v61 = vmul.f32 %v1871_v46, %v781_v55  ;;  %v956_v62 = vmax.f32 %v892_v50, 0.0  ;;  %v988_v63 = vmax.f32 %v924_v51, 0.0 }
 0x11a   :  { %691 = vst.msk [vmem:[#allocation2 + $0x58] sm:$0xff] %vm679_vm3, %v1598_v47  ;;  %723 = vst.msk [vmem:[#allocation2 + $0x158] sm:$0xff] %vm679_vm3, %v1630_v49  ;;  %v893_v0 = vadd.f32 %v1876_v48, %v822_v52  ;;  %v925_v1 = vadd.f32 %v1876_v48, %v854_v53  ;;  %v954_v2 = vmax.f32 %v890_v58, 0.0  ;;  %v986_v3 = vmax.f32 %v922_v59, 0.0 }
 0x11b   :  { %1304 = vst.msk [vmem:[#allocation8 + $0x84] sm:$0xf] %vm1270_vm4, %v1518_v41  ;;  %v891_v4 = vadd.f32 %v1876_v48, %v820_v60  ;;  %v923_v5 = vadd.f32 %v1876_v48, %v852_v61  ;;  %v1491_v6 = vpack.c.bf16 %v956_v62, %v956_v62  ;;  %v1523_v7 = vpack.c.bf16 %v988_v63, %v988_v63  ;;  %v1601_v16 = vpop.f32.mrb[12].mxu0  ;;  %v1633_v17 = vpop.f32.mrb[12].mxu1 }
 0x11c   :  { %689 = vst.msk [vmem:[#allocation2 + $0x48] sm:$0xff] %vm679_vm3, %v459_v56  ;;  %721 = vst.msk [vmem:[#allocation2 + $0x148] sm:$0xff] %vm679_vm3, %v587_v57  ;;  %v957_v8 = vmax.f32 %v893_v0, 0.0  ;;  %v989_v9 = vmax.f32 %v925_v1, 0.0  ;;  %v1489_v10 = vpack.c.bf16 %v954_v2, %v954_v2  ;;  %v1521_v11 = vpack.c.bf16 %v986_v3, %v986_v3  ;;  %v472_v24 = vpop.f32.mrb[13].mxu0  ;;  %v600_v25 = vpop.f32.mrb[13].mxu1 }
 0x11d   :  { %v955_v12 = vmax.f32 %v891_v4, 0.0  ;;  %v987_v13 = vmax.f32 %v923_v5, 0.0  ;;  %v754_v14 = vld [vmem:[#allocation2 + $0x50] sm:$0xff]  ;;  %1277 = vst.msk [vmem:[#allocation8 + $0x18] sm:$0xf] %vm1270_vm4, %v1491_v6  ;;  %v1602_v32 = vpop.f32.mrb[14].mxu0 }
 0x11e   :  { %v786_v15 = vld [vmem:[#allocation2 + $0x150] sm:$0xff]  ;;  %1309 = vst.msk [vmem:[#allocation8 + $0x98] sm:$0xf] %vm1270_vm4, %v1523_v7  ;;  %v1492_v18 = vpack.c.bf16 %v957_v8, %v957_v8  ;;  %v1524_v19 = vpack.c.bf16 %v989_v9, %v989_v9  ;;  %v825_v20 = vmul.f32 %v1871_v46, %v754_v14  ;;  %1275 = vst.msk [vmem:[#allocation8 + $0x10] sm:$0xf] %vm1270_vm4, %v1489_v10  ;;  %v1634_v33 = vpop.f32.mrb[14].mxu1 }
 0x11f   :  { %v857_v21 = vmul.f32 %v1871_v46, %v786_v15  ;;  %v752_v22 = vld [vmem:[#allocation2 + $0x40] sm:$0xff]  ;;  %694 = vst.msk [vmem:[#allocation2 + $0x70] sm:$0xff] %vm679_vm3, %v1601_v16  ;;  %726 = vst.msk [vmem:[#allocation2 + $0x170] sm:$0xff] %vm679_vm3, %v1633_v17  ;;  %v1490_v26 = vpack.c.bf16 %v955_v12, %v955_v12  ;;  %v1522_v27 = vpack.c.bf16 %v987_v13, %v987_v13  ;;  %v475_v40 = vpop.f32.mrb[15].mxu0  ;;  %v603_v41 = vpop.f32.mrb[15].mxu1 }
 0x120   :  { %v784_v23 = vld [vmem:[#allocation2 + $0x140] sm:$0xff]  ;;  %1307 = vst.msk [vmem:[#allocation8 + $0x90] sm:$0xf] %vm1270_vm4, %v1521_v11  ;;  %v823_v28 = vmul.f32 %v1871_v46, %v752_v22  ;;  %1278 = vst.msk [vmem:[#allocation8 + $0x1c] sm:$0xf] %vm1270_vm4, %v1492_v18  ;;  %v896_v34 = vadd.f32 %v1876_v48, %v825_v20 }
 0x121   :  { %v855_v29 = vmul.f32 %v1871_v46, %v784_v23  ;;  %v755_v30 = vld [vmem:[#allocation2 + $0x58] sm:$0xff]  ;;  %692 = vst.msk [vmem:[#allocation2 + $0x60] sm:$0xff] %vm679_vm3, %v472_v24  ;;  %724 = vst.msk [vmem:[#allocation2 + $0x160] sm:$0xff] %vm679_vm3, %v600_v25  ;;  %v928_v35 = vadd.f32 %v1876_v48, %v857_v21 }
 0x122   :  { %v787_v31 = vld [vmem:[#allocation2 + $0x158] sm:$0xff]  ;;  %1310 = vst.msk [vmem:[#allocation8 + $0x9c] sm:$0xf] %vm1270_vm4, %v1524_v19  ;;  %v826_v36 = vmul.f32 %v1871_v46, %v755_v30  ;;  %1276 = vst.msk [vmem:[#allocation8 + $0x14] sm:$0xf] %vm1270_vm4, %v1490_v26  ;;  %v894_v42 = vadd.f32 %v1876_v48, %v823_v28  ;;  %v960_v47 = vmax.f32 %v896_v34, 0.0 }
 0x123   :  { %v858_v37 = vmul.f32 %v1871_v46, %v787_v31  ;;  %v753_v38 = vld [vmem:[#allocation2 + $0x48] sm:$0xff]  ;;  %695 = vst.msk [vmem:[#allocation2 + $0x78] sm:$0xff] %vm679_vm3, %v1602_v32  ;;  %727 = vst.msk [vmem:[#allocation2 + $0x178] sm:$0xff] %vm679_vm3, %v1634_v33  ;;  %v926_v43 = vadd.f32 %v1876_v48, %v855_v29  ;;  %v992_v49 = vmax.f32 %v928_v35, 0.0  ;;  %v1605_v2 = vpop.f32.mrb[16].mxu0  ;;  %v1637_v3 = vpop.f32.mrb[16].mxu1 }
 0x124   :  { %v785_v39 = vld [vmem:[#allocation2 + $0x148] sm:$0xff]  ;;  %1308 = vst.msk [vmem:[#allocation8 + $0x94] sm:$0xf] %vm1270_vm4, %v1522_v27  ;;  %v824_v44 = vmul.f32 %v1871_v46, %v753_v38  ;;  %v897_v50 = vadd.f32 %v1876_v48, %v826_v36  ;;  %v958_v52 = vmax.f32 %v894_v42, 0.0  ;;  %v1495_v56 = vpack.c.bf16 %v960_v47, %v960_v47  ;;  %v488_v10 = vpop.f32.mrb[17].mxu0  ;;  %v616_v11 = vpop.f32.mrb[17].mxu1 }
 0x125   :  { %v856_v45 = vmul.f32 %v1871_v46, %v785_v39  ;;  %693 = vst.msk [vmem:[#allocation2 + $0x68] sm:$0xff] %vm679_vm3, %v475_v40  ;;  %725 = vst.msk [vmem:[#allocation2 + $0x168] sm:$0xff] %vm679_vm3, %v603_v41  ;;  %v929_v51 = vadd.f32 %v1876_v48, %v858_v37  ;;  %v990_v53 = vmax.f32 %v926_v43, 0.0  ;;  %v1527_v57 = vpack.c.bf16 %v992_v49, %v992_v49  ;;  %v1606_v18 = vpop.f32.mrb[18].mxu0  ;;  %v1638_v19 = vpop.f32.mrb[18].mxu1 }
 0x126   :  { %v895_v54 = vadd.f32 %v1876_v48, %v824_v44  ;;  %v961_v58 = vmax.f32 %v897_v50, 0.0  ;;  %v1493_v60 = vpack.c.bf16 %v958_v52, %v958_v52  ;;  %v758_v0 = vld [vmem:[#allocation2 + $0x70] sm:$0xff]  ;;  %1281 = vst.msk [vmem:[#allocation8 + $0x28] sm:$0xf] %vm1270_vm4, %v1495_v56  ;;  %v491_v26 = vpop.f32.mrb[19].mxu0  ;;  %v619_v27 = vpop.f32.mrb[19].mxu1 }
 0x127   :  { %v927_v55 = vadd.f32 %v1876_v48, %v856_v45  ;;  %v993_v59 = vmax.f32 %v929_v51, 0.0  ;;  %v1525_v61 = vpack.c.bf16 %v990_v53, %v990_v53  ;;  %v790_v1 = vld [vmem:[#allocation2 + $0x170] sm:$0xff]  ;;  %1313 = vst.msk [vmem:[#allocation8 + $0xa8] sm:$0xf] %vm1270_vm4, %v1527_v57  ;;  %v829_v6 = vmul.f32 %v1871_v46, %v758_v0 }
 0x128   :  { %v959_v62 = vmax.f32 %v895_v54, 0.0  ;;  %v1496_v4 = vpack.c.bf16 %v961_v58, %v961_v58  ;;  %v861_v7 = vmul.f32 %v1871_v46, %v790_v1  ;;  %v756_v8 = vld [vmem:[#allocation2 + $0x60] sm:$0xff]  ;;  %698 = vst.msk [vmem:[#allocation2 + $0x90] sm:$0xff] %vm679_vm3, %v1605_v2  ;;  %730 = vst.msk [vmem:[#allocation2 + $0x190] sm:$0xff] %vm679_vm3, %v1637_v3 }
 0x129   :  { %v991_v63 = vmax.f32 %v927_v55, 0.0  ;;  %v1528_v5 = vpack.c.bf16 %v993_v59, %v993_v59  ;;  %v788_v9 = vld [vmem:[#allocation2 + $0x160] sm:$0xff]  ;;  %1279 = vst.msk [vmem:[#allocation8 + $0x20] sm:$0xf] %vm1270_vm4, %v1493_v60  ;;  %1311 = vst.msk [vmem:[#allocation8 + $0xa0] sm:$0xf] %vm1270_vm4, %v1525_v61  ;;  %v827_v14 = vmul.f32 %v1871_v46, %v756_v8  ;;  %v900_v20 = vadd.f32 %v1876_v48, %v829_v6 }
 0x12a   :  { %v1494_v12 = vpack.c.bf16 %v959_v62, %v959_v62  ;;  %v859_v15 = vmul.f32 %v1871_v46, %v788_v9  ;;  %v759_v16 = vld [vmem:[#allocation2 + $0x78] sm:$0xff]  ;;  %696 = vst.msk [vmem:[#allocation2 + $0x80] sm:$0xff] %vm679_vm3, %v488_v10  ;;  %728 = vst.msk [vmem:[#allocation2 + $0x180] sm:$0xff] %vm679_vm3, %v616_v11  ;;  %v932_v21 = vadd.f32 %v1876_v48, %v861_v7 }
 0x12b   :  { %v1526_v13 = vpack.c.bf16 %v991_v63, %v991_v63  ;;  %v791_v17 = vld [vmem:[#allocation2 + $0x178] sm:$0xff]  ;;  %1282 = vst.msk [vmem:[#allocation8 + $0x2c] sm:$0xf] %vm1270_vm4, %v1496_v4  ;;  %1314 = vst.msk [vmem:[#allocation8 + $0xac] sm:$0xf] %vm1270_vm4, %v1528_v5  ;;  %v830_v22 = vmul.f32 %v1871_v46, %v759_v16  ;;  %v898_v28 = vadd.f32 %v1876_v48, %v827_v14  ;;  %v964_v32 = vmax.f32 %v900_v20, 0.0 }
 0x12c   :  { %v862_v23 = vmul.f32 %v1871_v46, %v791_v17  ;;  %v757_v24 = vld [vmem:[#allocation2 + $0x68] sm:$0xff]  ;;  %699 = vst.msk [vmem:[#allocation2 + $0x98] sm:$0xff] %vm679_vm3, %v1606_v18  ;;  %731 = vst.msk [vmem:[#allocation2 + $0x198] sm:$0xff] %vm679_vm3, %v1638_v19  ;;  %v930_v29 = vadd.f32 %v1876_v48, %v859_v15  ;;  %v996_v33 = vmax.f32 %v932_v21, 0.0  ;;  %v1609_v52 = vpop.f32.mrb[20].mxu0  ;;  %v1641_v53 = vpop.f32.mrb[20].mxu1 }
 0x12d   :  { %v789_v25 = vld [vmem:[#allocation2 + $0x168] sm:$0xff]  ;;  %1280 = vst.msk [vmem:[#allocation8 + $0x24] sm:$0xf] %vm1270_vm4, %v1494_v12  ;;  %1312 = vst.msk [vmem:[#allocation8 + $0xa4] sm:$0xf] %vm1270_vm4, %v1526_v13  ;;  %v828_v30 = vmul.f32 %v1871_v46, %v757_v24  ;;  %v901_v34 = vadd.f32 %v1876_v48, %v830_v22  ;;  %v962_v36 = vmax.f32 %v898_v28, 0.0  ;;  %v1499_v40 = vpack.c.bf16 %v964_v32, %v964_v32 }
 0x12e   :  { %v860_v31 = vmul.f32 %v1871_v46, %v789_v25  ;;  %697 = vst.msk [vmem:[#allocation2 + $0x88] sm:$0xff] %vm679_vm3, %v491_v26  ;;  %729 = vst.msk [vmem:[#allocation2 + $0x188] sm:$0xff] %vm679_vm3, %v619_v27  ;;  %v933_v35 = vadd.f32 %v1876_v48, %v862_v23  ;;  %v994_v37 = vmax.f32 %v930_v29, 0.0  ;;  %v1531_v41 = vpack.c.bf16 %v996_v33, %v996_v33  ;;  %v504_v60 = vpop.f32.mrb[21].mxu0  ;;  %v632_v61 = vpop.f32.mrb[21].mxu1 }
 0x12f   :  { %v899_v38 = vadd.f32 %v1876_v48, %v828_v30  ;;  %v965_v42 = vmax.f32 %v901_v34, 0.0  ;;  %v1497_v44 = vpack.c.bf16 %v962_v36, %v962_v36  ;;  %v762_v50 = vld [vmem:[#allocation2 + $0x90] sm:$0xff]  ;;  %1285 = vst.msk [vmem:[#allocation8 + $0x38] sm:$0xf] %vm1270_vm4, %v1499_v40  ;;  %v1610_v4 = vpop.f32.mrb[22].mxu0  ;;  %v1642_v5 = vpop.f32.mrb[22].mxu1 }
 0x130   :  { %v931_v39 = vadd.f32 %v1876_v48, %v860_v31  ;;  %v997_v43 = vmax.f32 %v933_v35, 0.0  ;;  %v1529_v45 = vpack.c.bf16 %v994_v37, %v994_v37  ;;  %v794_v51 = vld [vmem:[#allocation2 + $0x190] sm:$0xff]  ;;  %1317 = vst.msk [vmem:[#allocation8 + $0xb8] sm:$0xf] %vm1270_vm4, %v1531_v41  ;;  %v833_v56 = vmul.f32 %v1871_v46, %v762_v50  ;;  %v507_v12 = vpop.f32.mrb[23].mxu0  ;;  %v635_v13 = vpop.f32.mrb[23].mxu1 }
 0x131   :  { %v963_v47 = vmax.f32 %v899_v38, 0.0  ;;  %v1500_v54 = vpack.c.bf16 %v965_v42, %v965_v42  ;;  %v865_v57 = vmul.f32 %v1871_v46, %v794_v51  ;;  %v760_v58 = vld [vmem:[#allocation2 + $0x80] sm:$0xff]  ;;  %702 = vst.msk [vmem:[#allocation2 + $0xb0] sm:$0xff] %vm679_vm3, %v1609_v52  ;;  %734 = vst.msk [vmem:[#allocation2 + $0x1b0] sm:$0xff] %vm679_vm3, %v1641_v53 }
 0x132   :  { %v995_v49 = vmax.f32 %v931_v39, 0.0  ;;  %v1532_v55 = vpack.c.bf16 %v997_v43, %v997_v43  ;;  %v792_v59 = vld [vmem:[#allocation2 + $0x180] sm:$0xff]  ;;  %1283 = vst.msk [vmem:[#allocation8 + $0x30] sm:$0xf] %vm1270_vm4, %v1497_v44  ;;  %1315 = vst.msk [vmem:[#allocation8 + $0xb0] sm:$0xf] %vm1270_vm4, %v1529_v45  ;;  %v831_v0 = vmul.f32 %v1871_v46, %v760_v58  ;;  %v904_v6 = vadd.f32 %v1876_v48, %v833_v56 }
 0x133   :  { %v1498_v62 = vpack.c.bf16 %v963_v47, %v963_v47  ;;  %v863_v1 = vmul.f32 %v1871_v46, %v792_v59  ;;  %v763_v2 = vld [vmem:[#allocation2 + $0x98] sm:$0xff]  ;;  %700 = vst.msk [vmem:[#allocation2 + $0xa0] sm:$0xff] %vm679_vm3, %v504_v60  ;;  %732 = vst.msk [vmem:[#allocation2 + $0x1a0] sm:$0xff] %vm679_vm3, %v632_v61  ;;  %v936_v7 = vadd.f32 %v1876_v48, %v865_v57  ;;  %v1613_v36 = vpop.f32.mrb[24].mxu0  ;;  %v1645_v37 = vpop.f32.mrb[24].mxu1 }
 0x134   :  { %v1530_v63 = vpack.c.bf16 %v995_v49, %v995_v49  ;;  %v795_v3 = vld [vmem:[#allocation2 + $0x198] sm:$0xff]  ;;  %1286 = vst.msk [vmem:[#allocation8 + $0x3c] sm:$0xf] %vm1270_vm4, %v1500_v54  ;;  %1318 = vst.msk [vmem:[#allocation8 + $0xbc] sm:$0xf] %vm1270_vm4, %v1532_v55  ;;  %v834_v8 = vmul.f32 %v1871_v46, %v763_v2  ;;  %v902_v14 = vadd.f32 %v1876_v48, %v831_v0  ;;  %v968_v18 = vmax.f32 %v904_v6, 0.0 }
 0x135   :  { %v866_v9 = vmul.f32 %v1871_v46, %v795_v3  ;;  %v761_v10 = vld [vmem:[#allocation2 + $0x88] sm:$0xff]  ;;  %703 = vst.msk [vmem:[#allocation2 + $0xb8] sm:$0xff] %vm679_vm3, %v1610_v4  ;;  %735 = vst.msk [vmem:[#allocation2 + $0x1b8] sm:$0xff] %vm679_vm3, %v1642_v5  ;;  %v934_v15 = vadd.f32 %v1876_v48, %v863_v1  ;;  %v1000_v19 = vmax.f32 %v936_v7, 0.0  ;;  %v520_v44 = vpop.f32.mrb[25].mxu0  ;;  %v648_v45 = vpop.f32.mrb[25].mxu1 }
 0x136   :  { %v793_v11 = vld [vmem:[#allocation2 + $0x188] sm:$0xff]  ;;  %1284 = vst.msk [vmem:[#allocation8 + $0x34] sm:$0xf] %vm1270_vm4, %v1498_v62  ;;  %1316 = vst.msk [vmem:[#allocation8 + $0xb4] sm:$0xf] %vm1270_vm4, %v1530_v63  ;;  %v832_v16 = vmul.f32 %v1871_v46, %v761_v10  ;;  %v905_v20 = vadd.f32 %v1876_v48, %v834_v8  ;;  %v966_v22 = vmax.f32 %v902_v14, 0.0  ;;  %v1503_v26 = vpack.c.bf16 %v968_v18, %v968_v18 }
 0x137   :  { %v864_v17 = vmul.f32 %v1871_v46, %v793_v11  ;;  %701 = vst.msk [vmem:[#allocation2 + $0xa8] sm:$0xff] %vm679_vm3, %v507_v12  ;;  %733 = vst.msk [vmem:[#allocation2 + $0x1a8] sm:$0xff] %vm679_vm3, %v635_v13  ;;  %v937_v21 = vadd.f32 %v1876_v48, %v866_v9  ;;  %v998_v23 = vmax.f32 %v934_v15, 0.0  ;;  %v1535_v27 = vpack.c.bf16 %v1000_v19, %v1000_v19  ;;  %v1614_v54 = vpop.f32.mrb[26].mxu0  ;;  %v1646_v55 = vpop.f32.mrb[26].mxu1 }
 0x138   :  { %v903_v24 = vadd.f32 %v1876_v48, %v832_v16  ;;  %v969_v28 = vmax.f32 %v905_v20, 0.0  ;;  %v1501_v30 = vpack.c.bf16 %v966_v22, %v966_v22  ;;  %v766_v34 = vld [vmem:[#allocation2 + $0xb0] sm:$0xff]  ;;  %1289 = vst.msk [vmem:[#allocation8 + $0x48] sm:$0xf] %vm1270_vm4, %v1503_v26  ;;  %v523_v62 = vpop.f32.mrb[27].mxu0  ;;  %v651_v63 = vpop.f32.mrb[27].mxu1 }
 0x139   :  { %v935_v25 = vadd.f32 %v1876_v48, %v864_v17  ;;  %v1001_v29 = vmax.f32 %v937_v21, 0.0  ;;  %v1533_v31 = vpack.c.bf16 %v998_v23, %v998_v23  ;;  %v798_v35 = vld [vmem:[#allocation2 + $0x1b0] sm:$0xff]  ;;  %1321 = vst.msk [vmem:[#allocation8 + $0xc8] sm:$0xf] %vm1270_vm4, %v1535_v27  ;;  %v837_v40 = vmul.f32 %v1871_v46, %v766_v34 }
 0x13a   :  { %v967_v32 = vmax.f32 %v903_v24, 0.0  ;;  %v1504_v38 = vpack.c.bf16 %v969_v28, %v969_v28  ;;  %v869_v41 = vmul.f32 %v1871_v46, %v798_v35  ;;  %v764_v42 = vld [vmem:[#allocation2 + $0xa0] sm:$0xff]  ;;  %706 = vst.msk [vmem:[#allocation2 + $0xd0] sm:$0xff] %vm679_vm3, %v1613_v36  ;;  %738 = vst.msk [vmem:[#allocation2 + $0x1d0] sm:$0xff] %vm679_vm3, %v1645_v37 }
 0x13b   :  { %v999_v33 = vmax.f32 %v935_v25, 0.0  ;;  %v1536_v39 = vpack.c.bf16 %v1001_v29, %v1001_v29  ;;  %v796_v43 = vld [vmem:[#allocation2 + $0x1a0] sm:$0xff]  ;;  %1287 = vst.msk [vmem:[#allocation8 + $0x40] sm:$0xf] %vm1270_vm4, %v1501_v30  ;;  %1319 = vst.msk [vmem:[#allocation8 + $0xc0] sm:$0xf] %vm1270_vm4, %v1533_v31  ;;  %v835_v50 = vmul.f32 %v1871_v46, %v764_v42  ;;  %v908_v56 = vadd.f32 %v1876_v48, %v837_v40 }
 0x13c   :  { %v1502_v47 = vpack.c.bf16 %v967_v32, %v967_v32  ;;  %v867_v51 = vmul.f32 %v1871_v46, %v796_v43  ;;  %v767_v52 = vld [vmem:[#allocation2 + $0xb8] sm:$0xff]  ;;  %704 = vst.msk [vmem:[#allocation2 + $0xc0] sm:$0xff] %vm679_vm3, %v520_v44  ;;  %736 = vst.msk [vmem:[#allocation2 + $0x1c0] sm:$0xff] %vm679_vm3, %v648_v45  ;;  %v940_v57 = vadd.f32 %v1876_v48, %v869_v41  ;;  %v1617_v22 = vpop.f32.mrb[28].mxu0  ;;  %v1649_v23 = vpop.f32.mrb[28].mxu1 }
 0x13d   :  { %v1534_v49 = vpack.c.bf16 %v999_v33, %v999_v33  ;;  %v799_v53 = vld [vmem:[#allocation2 + $0x1b8] sm:$0xff]  ;;  %1290 = vst.msk [vmem:[#allocation8 + $0x4c] sm:$0xf] %vm1270_vm4, %v1504_v38  ;;  %1322 = vst.msk [vmem:[#allocation8 + $0xcc] sm:$0xf] %vm1270_vm4, %v1536_v39  ;;  %v838_v58 = vmul.f32 %v1871_v46, %v767_v52  ;;  %v906_v0 = vadd.f32 %v1876_v48, %v835_v50  ;;  %v972_v4 = vmax.f32 %v908_v56, 0.0 }
 0x13e   :  { %v870_v59 = vmul.f32 %v1871_v46, %v799_v53  ;;  %v765_v60 = vld [vmem:[#allocation2 + $0xa8] sm:$0xff]  ;;  %707 = vst.msk [vmem:[#allocation2 + $0xd8] sm:$0xff] %vm679_vm3, %v1614_v54  ;;  %739 = vst.msk [vmem:[#allocation2 + $0x1d8] sm:$0xff] %vm679_vm3, %v1646_v55  ;;  %v938_v1 = vadd.f32 %v1876_v48, %v867_v51  ;;  %v1004_v5 = vmax.f32 %v940_v57, 0.0  ;;  %v536_v30 = vpop.f32.mrb[29].mxu0  ;;  %v664_v31 = vpop.f32.mrb[29].mxu1 }
 0x13f   :  { %v797_v61 = vld [vmem:[#allocation2 + $0x1a8] sm:$0xff]  ;;  %1288 = vst.msk [vmem:[#allocation8 + $0x44] sm:$0xf] %vm1270_vm4, %v1502_v47  ;;  %1320 = vst.msk [vmem:[#allocation8 + $0xc4] sm:$0xf] %vm1270_vm4, %v1534_v49  ;;  %v836_v2 = vmul.f32 %v1871_v46, %v765_v60  ;;  %v909_v6 = vadd.f32 %v1876_v48, %v838_v58  ;;  %v970_v8 = vmax.f32 %v906_v0, 0.0  ;;  %v1507_v12 = vpack.c.bf16 %v972_v4, %v972_v4 }
 0x140   :  { %v868_v3 = vmul.f32 %v1871_v46, %v797_v61  ;;  %705 = vst.msk [vmem:[#allocation2 + $0xc8] sm:$0xff] %vm679_vm3, %v523_v62  ;;  %737 = vst.msk [vmem:[#allocation2 + $0x1c8] sm:$0xff] %vm679_vm3, %v651_v63  ;;  %v941_v7 = vadd.f32 %v1876_v48, %v870_v59  ;;  %v1002_v9 = vmax.f32 %v938_v1, 0.0  ;;  %v1539_v13 = vpack.c.bf16 %v1004_v5, %v1004_v5  ;;  %v1618_v38 = vpop.f32.mrb[30].mxu0  ;;  %v1650_v39 = vpop.f32.mrb[30].mxu1 }
 0x141   :  { %v907_v10 = vadd.f32 %v1876_v48, %v836_v2  ;;  %v973_v14 = vmax.f32 %v909_v6, 0.0  ;;  %v1505_v16 = vpack.c.bf16 %v970_v8, %v970_v8  ;;  %v770_v20 = vld [vmem:[#allocation2 + $0xd0] sm:$0xff]  ;;  %1293 = vst.msk [vmem:[#allocation8 + $0x58] sm:$0xf] %vm1270_vm4, %v1507_v12  ;;  %v539_v47 = vpop.f32.mrb[31].mxu0  ;;  %v667_v49 = vpop.f32.mrb[31].mxu1 }
 0x142   :  { %v939_v11 = vadd.f32 %v1876_v48, %v868_v3  ;;  %v1005_v15 = vmax.f32 %v941_v7, 0.0  ;;  %v1537_v17 = vpack.c.bf16 %v1002_v9, %v1002_v9  ;;  %v802_v21 = vld [vmem:[#allocation2 + $0x1d0] sm:$0xff]  ;;  %1325 = vst.msk [vmem:[#allocation8 + $0xd8] sm:$0xf] %vm1270_vm4, %v1539_v13  ;;  %v841_v26 = vmul.f32 %v1871_v46, %v770_v20 }
 0x143   :  { %v971_v18 = vmax.f32 %v907_v10, 0.0  ;;  %v1508_v24 = vpack.c.bf16 %v973_v14, %v973_v14  ;;  %v873_v27 = vmul.f32 %v1871_v46, %v802_v21  ;;  %v768_v28 = vld [vmem:[#allocation2 + $0xc0] sm:$0xff]  ;;  %710 = vst.msk [vmem:[#allocation2 + $0xf0] sm:$0xff] %vm679_vm3, %v1617_v22  ;;  %742 = vst.msk [vmem:[#allocation2 + $0x1f0] sm:$0xff] %vm679_vm3, %v1649_v23 }
 0x144   :  { %v1003_v19 = vmax.f32 %v939_v11, 0.0  ;;  %v1540_v25 = vpack.c.bf16 %v1005_v15, %v1005_v15  ;;  %v800_v29 = vld [vmem:[#allocation2 + $0x1c0] sm:$0xff]  ;;  %1291 = vst.msk [vmem:[#allocation8 + $0x50] sm:$0xf] %vm1270_vm4, %v1505_v16  ;;  %1323 = vst.msk [vmem:[#allocation8 + $0xd0] sm:$0xf] %vm1270_vm4, %v1537_v17  ;;  %v839_v34 = vmul.f32 %v1871_v46, %v768_v28  ;;  %v912_v40 = vadd.f32 %v1876_v48, %v841_v26 }
 0x145   :  { %v1506_v32 = vpack.c.bf16 %v971_v18, %v971_v18  ;;  %v871_v35 = vmul.f32 %v1871_v46, %v800_v29  ;;  %v771_v36 = vld [vmem:[#allocation2 + $0xd8] sm:$0xff]  ;;  %708 = vst.msk [vmem:[#allocation2 + $0xe0] sm:$0xff] %vm679_vm3, %v536_v30  ;;  %740 = vst.msk [vmem:[#allocation2 + $0x1e0] sm:$0xff] %vm679_vm3, %v664_v31  ;;  %v944_v41 = vadd.f32 %v1876_v48, %v873_v27 }
 0x146   :  { %v1538_v33 = vpack.c.bf16 %v1003_v19, %v1003_v19  ;;  %v803_v37 = vld [vmem:[#allocation2 + $0x1d8] sm:$0xff]  ;;  %1294 = vst.msk [vmem:[#allocation8 + $0x5c] sm:$0xf] %vm1270_vm4, %v1508_v24  ;;  %1326 = vst.msk [vmem:[#allocation8 + $0xdc] sm:$0xf] %vm1270_vm4, %v1540_v25  ;;  %v842_v42 = vmul.f32 %v1871_v46, %v771_v36  ;;  %v910_v50 = vadd.f32 %v1876_v48, %v839_v34  ;;  %v976_v54 = vmax.f32 %v912_v40, 0.0 }
 0x147   :  { %v874_v43 = vmul.f32 %v1871_v46, %v803_v37  ;;  %v769_v44 = vld [vmem:[#allocation2 + $0xc8] sm:$0xff]  ;;  %711 = vst.msk [vmem:[#allocation2 + $0xf8] sm:$0xff] %vm679_vm3, %v1618_v38  ;;  %743 = vst.msk [vmem:[#allocation2 + $0x1f8] sm:$0xff] %vm679_vm3, %v1650_v39  ;;  %v942_v51 = vadd.f32 %v1876_v48, %v871_v35  ;;  %v1008_v55 = vmax.f32 %v944_v41, 0.0 }
 0x148   :  { %v801_v45 = vld [vmem:[#allocation2 + $0x1c8] sm:$0xff]  ;;  %1292 = vst.msk [vmem:[#allocation8 + $0x54] sm:$0xf] %vm1270_vm4, %v1506_v32  ;;  %1324 = vst.msk [vmem:[#allocation8 + $0xd4] sm:$0xf] %vm1270_vm4, %v1538_v33  ;;  %v840_v52 = vmul.f32 %v1871_v46, %v769_v44  ;;  %v913_v56 = vadd.f32 %v1876_v48, %v842_v42  ;;  %v974_v58 = vmax.f32 %v910_v50, 0.0  ;;  %v1511_v62 = vpack.c.bf16 %v976_v54, %v976_v54 }
 0x149   :  { %v872_v53 = vmul.f32 %v1871_v46, %v801_v45  ;;  %709 = vst.msk [vmem:[#allocation2 + $0xe8] sm:$0xff] %vm679_vm3, %v539_v47  ;;  %741 = vst.msk [vmem:[#allocation2 + $0x1e8] sm:$0xff] %vm679_vm3, %v667_v49  ;;  %v945_v57 = vadd.f32 %v1876_v48, %v874_v43  ;;  %v1006_v59 = vmax.f32 %v942_v51, 0.0  ;;  %v1543_v63 = vpack.c.bf16 %v1008_v55, %v1008_v55 }
 0x14a   :  { %v911_v60 = vadd.f32 %v1876_v48, %v840_v52  ;;  %v977_v0 = vmax.f32 %v913_v56, 0.0  ;;  %v1509_v2 = vpack.c.bf16 %v974_v58, %v974_v58  ;;  %v774_v6 = vld [vmem:[#allocation2 + $0xf0] sm:$0xff]  ;;  %1297 = vst.msk [vmem:[#allocation8 + $0x68] sm:$0xf] %vm1270_vm4, %v1511_v62 }
 0x14b   :  { %v943_v61 = vadd.f32 %v1876_v48, %v872_v53  ;;  %v1009_v1 = vmax.f32 %v945_v57, 0.0  ;;  %v1541_v3 = vpack.c.bf16 %v1006_v59, %v1006_v59  ;;  %v806_v7 = vld [vmem:[#allocation2 + $0x1f0] sm:$0xff]  ;;  %1329 = vst.msk [vmem:[#allocation8 + $0xe8] sm:$0xf] %vm1270_vm4, %v1543_v63  ;;  %v845_v10 = vmul.f32 %v1871_v46, %v774_v6 }
 0x14c   :  { %v975_v4 = vmax.f32 %v911_v60, 0.0  ;;  %v1512_v8 = vpack.c.bf16 %v977_v0, %v977_v0  ;;  %v877_v11 = vmul.f32 %v1871_v46, %v806_v7  ;;  %v772_v12 = vld [vmem:[#allocation2 + $0xe0] sm:$0xff]  ;;  %1295 = vst.msk [vmem:[#allocation8 + $0x60] sm:$0xf] %vm1270_vm4, %v1509_v2 }
 0x14d   :  { %v1007_v5 = vmax.f32 %v943_v61, 0.0  ;;  %v1544_v9 = vpack.c.bf16 %v1009_v1, %v1009_v1  ;;  %v804_v13 = vld [vmem:[#allocation2 + $0x1e0] sm:$0xff]  ;;  %1327 = vst.msk [vmem:[#allocation8 + $0xe0] sm:$0xf] %vm1270_vm4, %v1541_v3  ;;  %v843_v16 = vmul.f32 %v1871_v46, %v772_v12  ;;  %v916_v20 = vadd.f32 %v1876_v48, %v845_v10 }
 0x14e   :  { %v1510_v14 = vpack.c.bf16 %v975_v4, %v975_v4  ;;  %v875_v17 = vmul.f32 %v1871_v46, %v804_v13  ;;  %v775_v18 = vld [vmem:[#allocation2 + $0xf8] sm:$0xff]  ;;  %1298 = vst.msk [vmem:[#allocation8 + $0x6c] sm:$0xf] %vm1270_vm4, %v1512_v8  ;;  %v948_v21 = vadd.f32 %v1876_v48, %v877_v11 }
 0x14f   :  { %v1542_v15 = vpack.c.bf16 %v1007_v5, %v1007_v5  ;;  %v807_v19 = vld [vmem:[#allocation2 + $0x1f8] sm:$0xff]  ;;  %1330 = vst.msk [vmem:[#allocation8 + $0xec] sm:$0xf] %vm1270_vm4, %v1544_v9  ;;  %v846_v22 = vmul.f32 %v1871_v46, %v775_v18  ;;  %v914_v26 = vadd.f32 %v1876_v48, %v843_v16  ;;  %v980_v30 = vmax.f32 %v916_v20, 0.0 }
 0x150   :  { %v878_v23 = vmul.f32 %v1871_v46, %v807_v19  ;;  %v773_v24 = vld [vmem:[#allocation2 + $0xe8] sm:$0xff]  ;;  %1296 = vst.msk [vmem:[#allocation8 + $0x64] sm:$0xf] %vm1270_vm4, %v1510_v14  ;;  %v946_v27 = vadd.f32 %v1876_v48, %v875_v17  ;;  %v1012_v31 = vmax.f32 %v948_v21, 0.0 }
 0x151   :  { %v805_v25 = vld [vmem:[#allocation2 + $0x1e8] sm:$0xff]  ;;  %1328 = vst.msk [vmem:[#allocation8 + $0xe4] sm:$0xf] %vm1270_vm4, %v1542_v15  ;;  %v844_v28 = vmul.f32 %v1871_v46, %v773_v24  ;;  %v917_v32 = vadd.f32 %v1876_v48, %v846_v22  ;;  %v978_v34 = vmax.f32 %v914_v26, 0.0  ;;  %v1515_v38 = vpack.c.bf16 %v980_v30, %v980_v30 }
 0x152   :  { %v876_v29 = vmul.f32 %v1871_v46, %v805_v25  ;;  %v949_v33 = vadd.f32 %v1876_v48, %v878_v23  ;;  %v1010_v35 = vmax.f32 %v946_v27, 0.0  ;;  %v1547_v39 = vpack.c.bf16 %v1012_v31, %v1012_v31 }
 0x153   :  { %v915_v36 = vadd.f32 %v1876_v48, %v844_v28  ;;  %v981_v40 = vmax.f32 %v917_v32, 0.0  ;;  %v1513_v42 = vpack.c.bf16 %v978_v34, %v978_v34  ;;  %1301 = vst.msk [vmem:[#allocation8 + $0x78] sm:$0xf] %vm1270_vm4, %v1515_v38 }
 0x154   :  { %v947_v37 = vadd.f32 %v1876_v48, %v876_v29  ;;  %v1013_v41 = vmax.f32 %v949_v33, 0.0  ;;  %v1545_v46 = vpack.c.bf16 %v1010_v35, %v1010_v35  ;;  %1333 = vst.msk [vmem:[#allocation8 + $0xf8] sm:$0xf] %vm1270_vm4, %v1547_v39 }
 0x155   :  { %v979_v43 = vmax.f32 %v915_v36, 0.0  ;;  %v1516_v45 = vpack.c.bf16 %v981_v40, %v981_v40  ;;  %1299 = vst.msk [vmem:[#allocation8 + $0x70] sm:$0xf] %vm1270_vm4, %v1513_v42 }
 0x156   :  { %v1011_v44 = vmax.f32 %v947_v37, 0.0  ;;  %v1548_v47 = vpack.c.bf16 %v1013_v41, %v1013_v41  ;;  %1331 = vst.msk [vmem:[#allocation8 + $0xf0] sm:$0xf] %vm1270_vm4, %v1545_v46 }
 0x157   :  { %v1514_v48 = vpack.c.bf16 %v979_v43, %v979_v43  ;;  %1302 = vst.msk [vmem:[#allocation8 + $0x7c] sm:$0xf] %vm1270_vm4, %v1516_v45 }
 0x158   :  { %v1546_v49 = vpack.c.bf16 %v1011_v44, %v1011_v44  ;;  %1334 = vst.msk [vmem:[#allocation8 + $0xfc] sm:$0xf] %vm1270_vm4, %v1548_v47 }
 0x159   :  { %1300 = vst.msk [vmem:[#allocation8 + $0x74] sm:$0xf] %vm1270_vm4, %v1514_v48 }
 0x15a   :  { %1332 = vst.msk [vmem:[#allocation8 + $0xf4] sm:$0xf] %vm1270_vm4, %v1546_v49 }
 0x15b   :  { %1750 = shalt.err (!%p1747_p6)
}
 0x15c   :  { %s1751_s20 = scalar_lea.hbm %s2145_s4, 4096 }
 0x15d   :  { %p1752_p7 = scmp.ne.s32.totalorder %s2145_s4, %s1751_s20  ;;  %p1755_p8 = scmp.lt.u32.totalorder %s1751_s20, %s2145_s4 }
 0x15f   :  { %p1757_p9 = pnand %p1755_p8, %p1752_p7 }
 0x161   :  { %1760 = shalt.err (!%p1757_p9)
}
 0x162   :  { %1346 = dma.vmem_to_hbm [thread:$0]  %s1341_s3, 4096, %s2145_s4, [#allocation5], %s1768_s25, %s1768_s25, %s1769_s26  }
 0x163   :  { %1765 = dma.done.wait [#allocation5], 4096  }
 0x164   :  { %1766 = vsyncadd [#allocation5], 4294963200 }
 0x165   :  { %1350 = vsyncpa [#allocation4], 1 }
 0x166   :  { %1351 = vsyncpa [#allocation7], 1 }
 0x167   :  { %1352 = vsyncpa [#allocation5], 1 }

</bundles_post_ra>
